<compile_context>
chip_gen: v7x
topology: tpu7x:2x2x1
jax: 0.10.0
libtpu: 0.0.40
codegen_flags: <defaults>
</compile_context>

<pallas_src>
import math
import jax
import jax.numpy as jnp
from jax.experimental import pallas as pl
from jax.experimental.pallas import tpu as pltpu


# ----------------------------------------------------------------------------
# Pallas kernel: one batch element per grid step.  The whole forward pass
# (graph normalization, 2x GCN-DMoN encoder, DMoN head, 2x GCN-Kipf decoder,
# loss reductions) is computed on-chip; only raw A (bf16) is an [N,N] resident.
# ----------------------------------------------------------------------------
def _dmon_gala_kernel(
    A_ref, X_ref, deg_ref,
    W1_ref, b1_ref,          # encoder layer 1: [Wh; Sh], bh
    W2_ref, b2_ref,          # encoder layer 2: [Wo; So], bo
    Wfc_ref, bfc_ref,        # DMoN head
    Wdh_ref, bdh_ref,        # decoder layer 1 (Kipf)
    Wdo_ref, bdo_ref,        # decoder layer 2 (Kipf)
    assignT_ref, misc_ref,
):
    A = A_ref[0]                       # [N, N]   bfloat16 (0/1 entries, exact)
    X = X_ref[0]                       # [N, Fin] f32
    deg = deg_ref[0]                   # [N, 1]   f32 (exact integer degrees)

    def dot32(a, b):
        return jnp.dot(a, b, preferred_element_type=jnp.float32)

    def a_mm(Z):                       # A @ Z : bf16 operands, f32 accumulation
        return dot32(A, Z.astype(jnp.bfloat16))

    def selu(x):
        alpha = 1.6732632423543772
        scale = 1.0507009873554805
        return scale * jnp.where(x > 0, x, alpha * (jnp.exp(x) - 1.0))

    # graph normalization (gcn_type='dmon', no self loops), never materialized:
    #   A_norm @ Z = D^-1/2 (A (D^-1/2 Z)),   A_sharp @ Z = 2Z - A_norm @ Z
    d_is = jnp.where(deg > 0.0, jax.lax.rsqrt(deg), 0.0)       # [N, 1]

    def anorm_mm(Z):
        return d_is * a_mm(d_is * Z)

    # --- encoder: two GCNLayer_Dmon layers, W/S pairs fused into one matmul:
    #     [A_norm Z | Z] @ [W; S] + b == (A_norm Z) @ W + Z @ S + b
    z1 = jnp.concatenate([anorm_mm(X), X], axis=-1)            # [N, 2*Fin]
    h = selu(dot32(z1, W1_ref[...]) + b1_ref[...])
    z2 = jnp.concatenate([anorm_mm(h), h], axis=-1)            # [N, 2*hid]
    h = selu(dot32(z2, W2_ref[...]) + b2_ref[...])

    # --- DMoN head (dropout_rate = 0 -> identity)
    logits = dot32(h, Wfc_ref[...]) + bfc_ref[...]             # [N, C]
    m = jnp.max(logits, axis=-1, keepdims=True)
    p = jnp.exp(logits - m)
    assignments = p * pl.reciprocal(jnp.sum(p, axis=-1, keepdims=True),
                                    approx=True)               # [N, C]
    # lane-dense store: [C, N] (wrapper transposes back to [N, C])
    assignT_ref[0] = jnp.transpose(assignments)

    C = assignments.shape[-1]

    # --- fused pass over A: both RHS (spectral A@S and decoder A@(D^-1/2 h))
    #     are ready now, so one MXU pass covers both.
    rhs = jnp.concatenate([assignments, d_is * h], axis=-1)    # [N, C + n_out]
    fused = a_mm(rhs)                                          # [N, C + n_out] f32
    AS = fused[:, :C]                                          # A @ S
    asharp_h = 2.0 * h - d_is * fused[:, C:]                   # (2I - A_norm) h

    # spectral (modularity) term: only the diagonal of (S^T A S - normalizer)
    # is needed -> no S^T, no [C,C] matmuls, no eye(C).
    inv_2ew = 1.0 / jnp.reshape(2.0 * jnp.sum(deg), (1, 1))    # exact scalar divide
    diag_gp = jnp.reshape(jnp.sum(assignments * AS), (1, 1))   # trace(S^T A S)
    nl = jnp.sum(assignments * deg, axis=0, keepdims=True)     # [1, C]  (= S^T deg)
    diag_norm = jnp.reshape(jnp.sum(nl * nl), (1, 1)) * inv_2ew
    spec = -(diag_gp - diag_norm) * inv_2ew                    # [1, 1]

    # --- decoder: two GCNLayer_Kipf layers on the sharpened adjacency
    hr = selu(dot32(asharp_h, Wdh_ref[...]) + bdh_ref[...])
    asharp_hr = 2.0 * hr - anorm_mm(hr)
    x_rec = jax.nn.sigmoid(dot32(asharp_hr, Wdo_ref[...]) + bdo_ref[...])
    rec_sq = jnp.reshape(jnp.sum((X - x_rec) ** 2), (1, 1))    # [1, 1]

    # pack the per-batch scalars into one (8,128)-aligned tile:
    #   [0,0] = spectral term, [0,1] = ||X - X_rec||^2
    sub = jax.lax.broadcasted_iota(jnp.int32, (8, 128), 0)
    lane = jax.lax.broadcasted_iota(jnp.int32, (8, 128), 1)
    misc_ref[0] = (jnp.where((sub == 0) & (lane == 0), spec, 0.0)
                   + jnp.where((sub == 0) & (lane == 1), rec_sq, 0.0))


# ----------------------------------------------------------------------------
# Wrapper
# ----------------------------------------------------------------------------
def _pick_vmem_limit():
    """Per-generation VMEM limit: ~75% of physical (96 MiB on v5e/v6e, 48 MiB on v7x)."""
    try:
        cap = int(pltpu.get_tpu_info().vmem_capacity_bytes)
    except Exception:
        cap = 64 * 1024 * 1024        # conservative fallback (v7x per-TC)
    return min((cap * 3) // 4, 112 * 1024 * 1024)


def dmon_gala_forward(A, X, params):
    B, N, Fin = X.shape
    C = params["Wfc"].shape[-1]

    # Exact trace-time preprocessing (A has 0/1 entries):
    deg = jnp.sum(A, axis=-1, keepdims=True)                        # [B, N, 1] f32
    A_bf16 = A.astype(jnp.bfloat16)                                 # halve the [N,N] resident
    # Weight-pair concat fusion (zero kernel cost):
    W1 = jnp.concatenate([params["Wh"], params["Sh"]], axis=0)      # [2*Fin, hid]
    W2 = jnp.concatenate([params["Wo"], params["So"]], axis=0)      # [2*hid, out]

    weights = [W1, params["bh"], W2, params["bo"],
               params["Wfc"], params["bfc"],
               params["Wdh"], params["bdh"], params["Wdo"], params["bdo"]]
    w_specs = [pl.BlockSpec(w.shape, lambda b: (0, 0)) for w in weights]

    assignT, misc = pl.pallas_call(
        _dmon_gala_kernel,
        out_shape=(
            jax.ShapeDtypeStruct((B, C, N), jnp.float32),   # assignments^T (lane-dense)
            jax.ShapeDtypeStruct((B, 8, 128), jnp.float32), # packed [spec, rec_sq, 0...]
        ),
        grid_spec=pltpu.PrefetchScalarGridSpec(
            num_scalar_prefetch=0,
            grid=(B,),
            in_specs=[
                pl.BlockSpec((1, N, N), lambda b: (b, 0, 0)),
                pl.BlockSpec((1, N, Fin), lambda b: (b, 0, 0)),
                pl.BlockSpec((1, N, 1), lambda b: (b, 0, 0)),
            ] + w_specs,
            out_specs=(
                pl.BlockSpec((1, C, N), lambda b: (b, 0, 0)),
                pl.BlockSpec((1, 8, 128), lambda b: (b, 0, 0)),
            ),
        ),
        compiler_params=pltpu.CompilerParams(
            dimension_semantics=("parallel",),       # batch steps are independent
            vmem_limit_bytes=_pick_vmem_limit(),
        ),
    )(A_bf16, X, deg, *weights)

    assignments = jnp.swapaxes(assignT, -1, -2)      # [B, N, C]
    cluster_sizes = jnp.sum(assignT, axis=-1)        # [B, C]
    spec_term = misc[:, 0, 0]                        # [B]
    rec_sq = misc[:, 0, 1]                           # [B]

    spectral_loss = jnp.sum(spec_term) / B
    collapse_loss = (jnp.linalg.norm(cluster_sizes) / N
                     * jnp.sqrt(jnp.float32(C)) - 1.0) / B
    rec_loss = jnp.sqrt(jnp.sum(rec_sq)) / (B * N)
    return assignments, spectral_loss, collapse_loss, rec_loss


# ----------------------------------------------------------------------------
# Pure-JAX reference (mirrors the PyTorch forward, batch_size = 1)
# ----------------------------------------------------------------------------
def reference_forward(A, X, params):
    hp = jax.lax.Precision.HIGHEST

    def mm(a, b):
        return jnp.matmul(a, b, precision=hp)

    def selu(x):
        alpha = 1.6732632423543772
        scale = 1.0507009873554805
        return scale * jnp.where(x > 0, x, alpha * (jnp.exp(x) - 1.0))

    B, N, _ = X.shape
    C = params["Wfc"].shape[-1]

    deg = A.sum(-1, keepdims=True)
    d_is = jnp.where(deg > 0.0, 1.0 / jnp.sqrt(deg), 0.0)
    A_norm = d_is * A * jnp.swapaxes(d_is, -1, -2)
    eye = jnp.eye(N, dtype=jnp.float32)[None]
    A_sharp = 2.0 * eye - A_norm

    h = selu(mm(mm(A_norm, X), params["Wh"]) + mm(X, params["Sh"]) + params["bh"])
    h = selu(mm(mm(A_norm, h), params["Wo"]) + mm(h, params["So"]) + params["bo"])

    s = jax.nn.softmax(mm(h, params["Wfc"]) + params["bfc"], axis=-1)
    cs = s.sum(1)
    ew = deg.sum((-1, -2))                                   # [B]
    gp = mm(mm(jnp.swapaxes(s, -1, -2), A), s)
    nl = mm(jnp.swapaxes(s, -1, -2), deg)
    nr = mm(jnp.swapaxes(deg, -1, -2), s)
    normalizer = (nl * nr) / 2.0 / ew[:, None, None]
    diag_sum = jnp.trace(gp - normalizer, axis1=-2, axis2=-1).sum()
    spectral = -diag_sum / 2.0 / ew[0] / B
    collapse = (jnp.linalg.norm(cs) / N * jnp.sqrt(jnp.float32(C)) - 1.0) / B

    hr = selu(mm(mm(A_sharp, h), params["Wdh"]) + params["bdh"])
    xr = jax.nn.sigmoid(mm(mm(A_sharp, hr), params["Wdo"]) + params["bdo"])
    rec = jnp.linalg.norm(X - xr) / (B * N)
    return s, spectral, collapse, rec


# ----------------------------------------------------------------------------
def make_params(key, n_in, n_hid, n_out, n_clusters):
    def unif(k, shape, bound):
        return jax.random.uniform(k, shape, jnp.float32, -bound, bound)

    ks = jax.random.split(key, 12)
    sh, so, sdh, sdo = (1.0 / math.sqrt(n_hid), 1.0 / math.sqrt(n_out),
                        1.0 / math.sqrt(n_hid), 1.0 / math.sqrt(n_in))
    sfc = 1.0 / math.sqrt(n_out)
    return {
        # GCNLayer_Dmon(n_in, n_hid)
        "Wh": unif(ks[0], (n_in, n_hid), sh), "Sh": unif(ks[1], (n_in, n_hid), sh),
        "bh": unif(ks[2], (1, n_hid), sh),
        # GCNLayer_Dmon(n_hid, n_out)
        "Wo": unif(ks[3], (n_hid, n_out), so), "So": unif(ks[4], (n_hid, n_out), so),
        "bo": unif(ks[5], (1, n_out), so),
        # DMoN fc: Linear(n_out, n_clusters)  (stored as [n_out, n_clusters])
        "Wfc": unif(ks[6], (n_out, n_clusters), sfc),
        "bfc": unif(ks[7], (1, n_clusters), sfc),
        # GCNLayer_Kipf(n_out, n_hid)
        "Wdh": unif(ks[8], (n_out, n_hid), sdh), "bdh": unif(ks[9], (1, n_hid), sdh),
        # GCNLayer_Kipf(n_hid, n_in)
        "Wdo": unif(ks[10], (n_hid, n_in), sdo), "bdo": unif(ks[11], (1, n_in), sdo),
    }


if __name__ == "__main__":
    B, N = 1, 16            # batch_size=1: see broadcasting note at top of file
    n_in, n_hid, n_out, n_clusters = 8, 32, 16, 4

    key = jax.random.PRNGKey(0)
    k_a, k_x, k_p = jax.random.split(key, 3)

    # symmetric 0/1 adjacency without self loops
    A_raw = (jax.random.uniform(k_a, (B, N, N)) > 0.5).astype(jnp.float32)
    A = jnp.maximum(A_raw, jnp.swapaxes(A_raw, -1, -2))
    A = A * (1.0 - jnp.eye(N, dtype=jnp.float32))[None]
    X = jax.random.normal(k_x, (B, N, n_in), jnp.float32)

    params = make_params(k_p, n_in, n_hid, n_out, n_clusters)

    assignments, spec_l, coll_l, rec_l = jax.block_until_ready(
        dmon_gala_forward(A, X, params))

    # f32 reference; bf16 is only used on the A-matmuls (A itself is exact in bf16),
    # measured error stays well under the existing 2e-3 tolerance at these shapes.
    s_ref, spec_ref, coll_ref, rec_ref = reference_forward(A, X, params)
    assert jnp.allclose(assignments, s_ref, rtol=2e-3, atol=2e-3)
    assert jnp.allclose(spec_l, spec_ref, rtol=2e-3, atol=2e-3)
    assert jnp.allclose(coll_l, coll_ref, rtol=2e-3, atol=2e-3)
    assert jnp.allclose(rec_l, rec_ref, rtol=2e-3, atol=2e-3)

    print("KERNEL_OK")
</pallas_src>

<mosaic_0001>
module attributes {stable_mosaic.version = 11 : i64} {
  func.func @_dmon_gala_kernel(%arg0: i32, %arg1: memref<1x16x16xbf16, #tpu.memory_space<vmem>>, %arg2: memref<1x16x8xf32, #tpu.memory_space<vmem>>, %arg3: memref<1x16x1xf32, #tpu.memory_space<vmem>>, %arg4: memref<16x32xf32, #tpu.memory_space<vmem>>, %arg5: memref<1x32xf32, #tpu.memory_space<vmem>>, %arg6: memref<64x16xf32, #tpu.memory_space<vmem>>, %arg7: memref<1x16xf32, #tpu.memory_space<vmem>>, %arg8: memref<16x4xf32, #tpu.memory_space<vmem>>, %arg9: memref<1x4xf32, #tpu.memory_space<vmem>>, %arg10: memref<16x32xf32, #tpu.memory_space<vmem>>, %arg11: memref<1x32xf32, #tpu.memory_space<vmem>>, %arg12: memref<32x8xf32, #tpu.memory_space<vmem>>, %arg13: memref<1x8xf32, #tpu.memory_space<vmem>>, %arg14: memref<1x4x16xf32, #tpu.memory_space<vmem>>, %arg15: memref<1x8x128xf32, #tpu.memory_space<vmem>>) attributes {dimension_semantics = [#tpu.dimension_semantics<parallel>], iteration_bounds = array<i64: 1>, scalar_prefetch = 0 : i64, scratch_operands = 0 : i64, tpu.core_type = #tpu.core_type<tc>, window_params = [{transform_indices = @transform_0, window_bounds = array<i64: 1, 16, 16>}, {transform_indices = @transform_1, window_bounds = array<i64: 1, 16, 8>}, {transform_indices = @transform_2, window_bounds = array<i64: 1, 16, 1>}, {pipeline_mode = #tpu.pipeline_mode<synchronous>, transform_indices = @transform_3, window_bounds = array<i64: 16, 32>}, {pipeline_mode = #tpu.pipeline_mode<synchronous>, transform_indices = @transform_4, window_bounds = array<i64: 1, 32>}, {pipeline_mode = #tpu.pipeline_mode<synchronous>, transform_indices = @transform_5, window_bounds = array<i64: 64, 16>}, {pipeline_mode = #tpu.pipeline_mode<synchronous>, transform_indices = @transform_6, window_bounds = array<i64: 1, 16>}, {pipeline_mode = #tpu.pipeline_mode<synchronous>, transform_indices = @transform_7, window_bounds = array<i64: 16, 4>}, {pipeline_mode = #tpu.pipeline_mode<synchronous>, transform_indices = @transform_8, window_bounds = array<i64: 1, 4>}, {pipeline_mode = #tpu.pipeline_mode<synchronous>, transform_indices = @transform_9, window_bounds = array<i64: 16, 32>}, {pipeline_mode = #tpu.pipeline_mode<synchronous>, transform_indices = @transform_10, window_bounds = array<i64: 1, 32>}, {pipeline_mode = #tpu.pipeline_mode<synchronous>, transform_indices = @transform_11, window_bounds = array<i64: 32, 8>}, {pipeline_mode = #tpu.pipeline_mode<synchronous>, transform_indices = @transform_12, window_bounds = array<i64: 1, 8>}, {transform_indices = @transform_13, window_bounds = array<i64: 1, 4, 16>}, {transform_indices = @transform_14, window_bounds = array<i64: 1, 8, 128>}]} {
    %c0 = arith.constant 0 : index
    %c0_0 = arith.constant 0 : index
    %c0_1 = arith.constant 0 : index
    %0 = vector.load %arg1[%c0, %c0_0, %c0_1] : memref<1x16x16xbf16, #tpu.memory_space<vmem>>, vector<1x16x16xbf16>
    %1 = vector.shape_cast %0 : vector<1x16x16xbf16> to vector<16x16xbf16>
    %c0_2 = arith.constant 0 : index
    %c0_3 = arith.constant 0 : index
    %c0_4 = arith.constant 0 : index
    %2 = vector.load %arg2[%c0_2, %c0_3, %c0_4] : memref<1x16x8xf32, #tpu.memory_space<vmem>>, vector<1x16x8xf32>
    %3 = vector.shape_cast %2 : vector<1x16x8xf32> to vector<16x8xf32>
    %c0_5 = arith.constant 0 : index
    %c0_6 = arith.constant 0 : index
    %c0_7 = arith.constant 0 : index
    %4 = vector.load %arg3[%c0_5, %c0_6, %c0_7] : memref<1x16x1xf32, #tpu.memory_space<vmem>>, vector<1x16x1xf32>
    %5 = vector.shape_cast %4 : vector<1x16x1xf32> to vector<16x1xf32>
    %cst = arith.constant 0.000000e+00 : f32
    %6 = vector.broadcast %cst : f32 to vector<16x1xf32>
    %7 = arith.cmpf ogt, %5, %6 : vector<16x1xf32>
    %8 = math.rsqrt %5 : vector<16x1xf32>
    %cst_8 = arith.constant 0.000000e+00 : f32
    %9 = vector.broadcast %cst_8 : f32 to vector<16x1xf32>
    %10 = arith.select %7, %8, %9 : vector<16x1xi1>, vector<16x1xf32>
    %11 = vector.broadcast %10 : vector<16x1xf32> to vector<16x8xf32>
    %12 = arith.mulf %11, %3 : vector<16x8xf32>
    %13 = arith.truncf %12 : vector<16x8xf32> to vector<16x8xbf16>
    %cst_9 = arith.constant dense<0.000000e+00> : vector<16x8xf32>
    %14 = tpu.matmul %1, %13, %cst_9 {dimension_numbers = #tpu.dot_dimension_numbers<[1], [0], [0], [1], [0, 0, 1, 1], [], []>} : vector<16x16xbf16>, vector<16x8xbf16>, vector<16x8xf32> -> vector<16x8xf32>
    %15 = vector.broadcast %10 : vector<16x1xf32> to vector<16x8xf32>
    %16 = arith.mulf %15, %14 : vector<16x8xf32>
    %17 = tpu.concatenate %16, %3 in 1 : vector<16x8xf32>, vector<16x8xf32> -> vector<16x16xf32>
    %c0_10 = arith.constant 0 : index
    %c0_11 = arith.constant 0 : index
    %18 = vector.load %arg4[%c0_10, %c0_11] : memref<16x32xf32, #tpu.memory_space<vmem>>, vector<16x32xf32>
    %cst_12 = arith.constant dense<0.000000e+00> : vector<16x32xf32>
    %19 = tpu.matmul %17, %18, %cst_12 {dimension_numbers = #tpu.dot_dimension_numbers<[1], [0], [0], [1], [0, 0, 1, 1], [], []>} : vector<16x16xf32>, vector<16x32xf32>, vector<16x32xf32> -> vector<16x32xf32>
    %c0_13 = arith.constant 0 : index
    %c0_14 = arith.constant 0 : index
    %20 = vector.load %arg5[%c0_13, %c0_14] : memref<1x32xf32, #tpu.memory_space<vmem>>, vector<1x32xf32>
    %21 = vector.broadcast %20 : vector<1x32xf32> to vector<16x32xf32>
    %22 = arith.addf %19, %21 : vector<16x32xf32>
    %cst_15 = arith.constant 0.000000e+00 : f32
    %23 = vector.broadcast %cst_15 : f32 to vector<16x32xf32>
    %24 = arith.cmpf ogt, %22, %23 : vector<16x32xf32>
    %25 = math.exp %22 : vector<16x32xf32>
    %cst_16 = arith.constant 1.000000e+00 : f32
    %26 = vector.broadcast %cst_16 : f32 to vector<16x32xf32>
    %27 = arith.subf %25, %26 : vector<16x32xf32>
    %cst_17 = arith.constant 1.67326319 : f32
    %28 = vector.broadcast %cst_17 : f32 to vector<16x32xf32>
    %29 = arith.mulf %28, %27 : vector<16x32xf32>
    %30 = arith.select %24, %22, %29 : vector<16x32xi1>, vector<16x32xf32>
    %cst_18 = arith.constant 1.05070102 : f32
    %31 = vector.broadcast %cst_18 : f32 to vector<16x32xf32>
    %32 = arith.mulf %31, %30 : vector<16x32xf32>
    %33 = vector.broadcast %10 : vector<16x1xf32> to vector<16x32xf32>
    %34 = arith.mulf %33, %32 : vector<16x32xf32>
    %35 = arith.truncf %34 : vector<16x32xf32> to vector<16x32xbf16>
    %cst_19 = arith.constant dense<0.000000e+00> : vector<16x32xf32>
    %36 = tpu.matmul %1, %35, %cst_19 {dimension_numbers = #tpu.dot_dimension_numbers<[1], [0], [0], [1], [0, 0, 1, 1], [], []>} : vector<16x16xbf16>, vector<16x32xbf16>, vector<16x32xf32> -> vector<16x32xf32>
    %37 = vector.broadcast %10 : vector<16x1xf32> to vector<16x32xf32>
    %38 = arith.mulf %37, %36 : vector<16x32xf32>
    %39 = tpu.concatenate %38, %32 in 1 : vector<16x32xf32>, vector<16x32xf32> -> vector<16x64xf32>
    %c0_20 = arith.constant 0 : index
    %c0_21 = arith.constant 0 : index
    %40 = vector.load %arg6[%c0_20, %c0_21] : memref<64x16xf32, #tpu.memory_space<vmem>>, vector<64x16xf32>
    %cst_22 = arith.constant dense<0.000000e+00> : vector<16x16xf32>
    %41 = tpu.matmul %39, %40, %cst_22 {dimension_numbers = #tpu.dot_dimension_numbers<[1], [0], [0], [1], [0, 0, 1, 1], [], []>} : vector<16x64xf32>, vector<64x16xf32>, vector<16x16xf32> -> vector<16x16xf32>
    %c0_23 = arith.constant 0 : index
    %c0_24 = arith.constant 0 : index
    %42 = vector.load %arg7[%c0_23, %c0_24] : memref<1x16xf32, #tpu.memory_space<vmem>>, vector<1x16xf32>
    %43 = vector.broadcast %42 : vector<1x16xf32> to vector<16x16xf32>
    %44 = arith.addf %41, %43 : vector<16x16xf32>
    %cst_25 = arith.constant 0.000000e+00 : f32
    %45 = vector.broadcast %cst_25 : f32 to vector<16x16xf32>
    %46 = arith.cmpf ogt, %44, %45 : vector<16x16xf32>
    %47 = math.exp %44 : vector<16x16xf32>
    %cst_26 = arith.constant 1.000000e+00 : f32
    %48 = vector.broadcast %cst_26 : f32 to vector<16x16xf32>
    %49 = arith.subf %47, %48 : vector<16x16xf32>
    %cst_27 = arith.constant 1.67326319 : f32
    %50 = vector.broadcast %cst_27 : f32 to vector<16x16xf32>
    %51 = arith.mulf %50, %49 : vector<16x16xf32>
    %52 = arith.select %46, %44, %51 : vector<16x16xi1>, vector<16x16xf32>
    %cst_28 = arith.constant 1.05070102 : f32
    %53 = vector.broadcast %cst_28 : f32 to vector<16x16xf32>
    %54 = arith.mulf %53, %52 : vector<16x16xf32>
    %c0_29 = arith.constant 0 : index
    %c0_30 = arith.constant 0 : index
    %55 = vector.load %arg8[%c0_29, %c0_30] : memref<16x4xf32, #tpu.memory_space<vmem>>, vector<16x4xf32>
    %cst_31 = arith.constant dense<0.000000e+00> : vector<16x4xf32>
    %56 = tpu.matmul %54, %55, %cst_31 {dimension_numbers = #tpu.dot_dimension_numbers<[1], [0], [0], [1], [0, 0, 1, 1], [], []>} : vector<16x16xf32>, vector<16x4xf32>, vector<16x4xf32> -> vector<16x4xf32>
    %c0_32 = arith.constant 0 : index
    %c0_33 = arith.constant 0 : index
    %57 = vector.load %arg9[%c0_32, %c0_33] : memref<1x4xf32, #tpu.memory_space<vmem>>, vector<1x4xf32>
    %58 = vector.broadcast %57 : vector<1x4xf32> to vector<16x4xf32>
    %59 = arith.addf %56, %58 : vector<16x4xf32>
    %cst_34 = arith.constant dense<0xFF800000> : vector<16xf32>
    %60 = vector.multi_reduction <maximumf>, %59, %cst_34 [1] : vector<16x4xf32> to vector<16xf32>
    %61 = vector.shape_cast %60 : vector<16xf32> to vector<16x1xf32>
    %62 = vector.broadcast %61 : vector<16x1xf32> to vector<16x4xf32>
    %63 = arith.subf %59, %62 : vector<16x4xf32>
    %64 = math.exp %63 : vector<16x4xf32>
    %cst_35 = arith.constant dense<0.000000e+00> : vector<16xf32>
    %65 = vector.multi_reduction <add>, %64, %cst_35 [1] : vector<16x4xf32> to vector<16xf32>
    %66 = vector.shape_cast %65 : vector<16xf32> to vector<16x1xf32>
    %67 = tpu.reciprocal %66 {approx = true} : vector<16x1xf32> -> vector<16x1xf32>
    %68 = vector.broadcast %67 : vector<16x1xf32> to vector<16x4xf32>
    %69 = arith.mulf %64, %68 : vector<16x4xf32>
    %70 = tpu.transpose %69, [1, 0] : vector<16x4xf32> -> vector<4x16xf32>
    %c0_36 = arith.constant 0 : index
    %c0_37 = arith.constant 0 : index
    %c0_38 = arith.constant 0 : index
    %71 = vector.load %arg14[%c0_36, %c0_37, %c0_38] : memref<1x4x16xf32, #tpu.memory_space<vmem>>, vector<1x4x16xf32>
    %72 = vector.shape_cast %71 : vector<1x4x16xf32> to vector<4x16xf32>
    %73 = vector.shape_cast %70 : vector<4x16xf32> to vector<1x4x16xf32>
    tpu.vector_store %arg14[%c0_36, %c0_37, %c0_38], %73 {strides = array<i32>} : memref<1x4x16xf32, #tpu.memory_space<vmem>>, vector<1x4x16xf32>,
    %74 = vector.broadcast %10 : vector<16x1xf32> to vector<16x16xf32>
    %75 = arith.mulf %74, %54 : vector<16x16xf32>
    %76 = tpu.concatenate %69, %75 in 1 : vector<16x4xf32>, vector<16x16xf32> -> vector<16x20xf32>
    %77 = arith.truncf %76 : vector<16x20xf32> to vector<16x20xbf16>
    %cst_39 = arith.constant dense<0.000000e+00> : vector<16x20xf32>
    %78 = tpu.matmul %1, %77, %cst_39 {dimension_numbers = #tpu.dot_dimension_numbers<[1], [0], [0], [1], [0, 0, 1, 1], [], []>} : vector<16x16xbf16>, vector<16x20xbf16>, vector<16x20xf32> -> vector<16x20xf32>
    %79 = vector.extract_strided_slice %78 {offsets = [0, 0], sizes = [16, 4], strides = [1, 1]} : vector<16x20xf32> to vector<16x4xf32>
    %cst_40 = arith.constant 2.000000e+00 : f32
    %80 = vector.broadcast %cst_40 : f32 to vector<16x16xf32>
    %81 = arith.mulf %80, %54 : vector<16x16xf32>
    %82 = vector.extract_strided_slice %78 {offsets = [0, 4], sizes = [16, 16], strides = [1, 1]} : vector<16x20xf32> to vector<16x16xf32>
    %83 = vector.broadcast %10 : vector<16x1xf32> to vector<16x16xf32>
    %84 = arith.mulf %83, %82 : vector<16x16xf32>
    %85 = arith.subf %81, %84 : vector<16x16xf32>
    %86 = vector.shape_cast %5 : vector<16x1xf32> to vector<1x16x1xf32>
    %cst_41 = arith.constant dense<0.000000e+00> : vector<1xf32>
    %87 = vector.multi_reduction <add>, %86, %cst_41 [1, 2] : vector<1x16x1xf32> to vector<1xf32>
    %88 = vector.shape_cast %87 : vector<1xf32> to vector<1x1x1xf32>
    %89 = vector.extract %88[0, 0, 0] : f32 from vector<1x1x1xf32>
    %cst_42 = arith.constant 2.000000e+00 : f32
    %90 = arith.mulf %cst_42, %89 : f32
    %91 = vector.broadcast %90 : f32 to vector<1x1xf32>
    %cst_43 = arith.constant 1.000000e+00 : f32
    %92 = vector.broadcast %cst_43 : f32 to vector<1x1xf32>
    %93 = arith.divf %92, %91 : vector<1x1xf32>
    %94 = arith.mulf %69, %79 : vector<16x4xf32>
    %95 = vector.shape_cast %94 : vector<16x4xf32> to vector<1x16x4xf32>
    %cst_44 = arith.constant dense<0.000000e+00> : vector<1xf32>
    %96 = vector.multi_reduction <add>, %95, %cst_44 [1, 2] : vector<1x16x4xf32> to vector<1xf32>
    %97 = vector.shape_cast %96 : vector<1xf32> to vector<1x1x1xf32>
    %98 = vector.extract %97[0, 0, 0] : f32 from vector<1x1x1xf32>
    %99 = vector.broadcast %98 : f32 to vector<1x1xf32>
    %100 = vector.broadcast %5 : vector<16x1xf32> to vector<16x4xf32>
    %101 = arith.mulf %69, %100 : vector<16x4xf32>
    %cst_45 = arith.constant dense<0.000000e+00> : vector<4xf32>
    %102 = vector.multi_reduction <add>, %101, %cst_45 [0] : vector<16x4xf32> to vector<4xf32>
    %103 = vector.shape_cast %102 : vector<4xf32> to vector<1x4xf32>
    %104 = arith.mulf %103, %103 : vector<1x4xf32>
    %105 = vector.shape_cast %104 : vector<1x4xf32> to vector<1x1x4xf32>
    %cst_46 = arith.constant dense<0.000000e+00> : vector<1xf32>
    %106 = vector.multi_reduction <add>, %105, %cst_46 [1, 2] : vector<1x1x4xf32> to vector<1xf32>
    %107 = vector.shape_cast %106 : vector<1xf32> to vector<1x1x1xf32>
    %108 = vector.extract %107[0, 0, 0] : f32 from vector<1x1x1xf32>
    %109 = vector.broadcast %108 : f32 to vector<1x1xf32>
    %110 = arith.mulf %109, %93 : vector<1x1xf32>
    %111 = arith.subf %99, %110 : vector<1x1xf32>
    %cst_47 = arith.constant 0.000000e+00 : f32
    %112 = vector.broadcast %cst_47 : f32 to vector<1x1xf32>
    %113 = arith.subf %112, %111 : vector<1x1xf32>
    %114 = arith.mulf %113, %93 : vector<1x1xf32>
    %c0_48 = arith.constant 0 : index
    %c0_49 = arith.constant 0 : index
    %115 = vector.load %arg10[%c0_48, %c0_49] : memref<16x32xf32, #tpu.memory_space<vmem>>, vector<16x32xf32>
    %cst_50 = arith.constant dense<0.000000e+00> : vector<16x32xf32>
    %116 = tpu.matmul %85, %115, %cst_50 {dimension_numbers = #tpu.dot_dimension_numbers<[1], [0], [0], [1], [0, 0, 1, 1], [], []>} : vector<16x16xf32>, vector<16x32xf32>, vector<16x32xf32> -> vector<16x32xf32>
    %c0_51 = arith.constant 0 : index
    %c0_52 = arith.constant 0 : index
    %117 = vector.load %arg11[%c0_51, %c0_52] : memref<1x32xf32, #tpu.memory_space<vmem>>, vector<1x32xf32>
    %118 = vector.broadcast %117 : vector<1x32xf32> to vector<16x32xf32>
    %119 = arith.addf %116, %118 : vector<16x32xf32>
    %cst_53 = arith.constant 0.000000e+00 : f32
    %120 = vector.broadcast %cst_53 : f32 to vector<16x32xf32>
    %121 = arith.cmpf ogt, %119, %120 : vector<16x32xf32>
    %122 = math.exp %119 : vector<16x32xf32>
    %cst_54 = arith.constant 1.000000e+00 : f32
    %123 = vector.broadcast %cst_54 : f32 to vector<16x32xf32>
    %124 = arith.subf %122, %123 : vector<16x32xf32>
    %cst_55 = arith.constant 1.67326319 : f32
    %125 = vector.broadcast %cst_55 : f32 to vector<16x32xf32>
    %126 = arith.mulf %125, %124 : vector<16x32xf32>
    %127 = arith.select %121, %119, %126 : vector<16x32xi1>, vector<16x32xf32>
    %cst_56 = arith.constant 1.05070102 : f32
    %128 = vector.broadcast %cst_56 : f32 to vector<16x32xf32>
    %129 = arith.mulf %128, %127 : vector<16x32xf32>
    %cst_57 = arith.constant 2.000000e+00 : f32
    %130 = vector.broadcast %cst_57 : f32 to vector<16x32xf32>
    %131 = arith.mulf %130, %129 : vector<16x32xf32>
    %132 = vector.broadcast %10 : vector<16x1xf32> to vector<16x32xf32>
    %133 = arith.mulf %132, %129 : vector<16x32xf32>
    %134 = arith.truncf %133 : vector<16x32xf32> to vector<16x32xbf16>
    %cst_58 = arith.constant dense<0.000000e+00> : vector<16x32xf32>
    %135 = tpu.matmul %1, %134, %cst_58 {dimension_numbers = #tpu.dot_dimension_numbers<[1], [0], [0], [1], [0, 0, 1, 1], [], []>} : vector<16x16xbf16>, vector<16x32xbf16>, vector<16x32xf32> -> vector<16x32xf32>
    %136 = vector.broadcast %10 : vector<16x1xf32> to vector<16x32xf32>
    %137 = arith.mulf %136, %135 : vector<16x32xf32>
    %138 = arith.subf %131, %137 : vector<16x32xf32>
    %c0_59 = arith.constant 0 : index
    %c0_60 = arith.constant 0 : index
    %139 = vector.load %arg12[%c0_59, %c0_60] : memref<32x8xf32, #tpu.memory_space<vmem>>, vector<32x8xf32>
    %cst_61 = arith.constant dense<0.000000e+00> : vector<16x8xf32>
    %140 = tpu.matmul %138, %139, %cst_61 {dimension_numbers = #tpu.dot_dimension_numbers<[1], [0], [0], [1], [0, 0, 1, 1], [], []>} : vector<16x32xf32>, vector<32x8xf32>, vector<16x8xf32> -> vector<16x8xf32>
    %c0_62 = arith.constant 0 : index
    %c0_63 = arith.constant 0 : index
    %141 = vector.load %arg13[%c0_62, %c0_63] : memref<1x8xf32, #tpu.memory_space<vmem>>, vector<1x8xf32>
    %142 = vector.broadcast %141 : vector<1x8xf32> to vector<16x8xf32>
    %143 = arith.addf %140, %142 : vector<16x8xf32>
    %144 = arith.negf %143 : vector<16x8xf32>
    %145 = math.exp %144 : vector<16x8xf32>
    %cst_64 = arith.constant 1.000000e+00 : f32
    %146 = vector.broadcast %cst_64 : f32 to vector<16x8xf32>
    %147 = arith.addf %146, %145 : vector<16x8xf32>
    %148 = arith.divf %146, %147 : vector<16x8xf32>
    %149 = arith.subf %3, %148 : vector<16x8xf32>
    %150 = arith.mulf %149, %149 : vector<16x8xf32>
    %151 = vector.shape_cast %150 : vector<16x8xf32> to vector<1x16x8xf32>
    %cst_65 = arith.constant dense<0.000000e+00> : vector<1xf32>
    %152 = vector.multi_reduction <add>, %151, %cst_65 [1, 2] : vector<1x16x8xf32> to vector<1xf32>
    %153 = vector.shape_cast %152 : vector<1xf32> to vector<1x1x1xf32>
    %154 = vector.extract %153[0, 0, 0] : f32 from vector<1x1x1xf32>
    %155 = vector.broadcast %154 : f32 to vector<1x1xf32>
    %156 = tpu.iota {dimensions = array<i32: 0>} : vector<8x128xi32>
    %157 = tpu.iota {dimensions = array<i32: 1>} : vector<8x128xi32>
    %c0_i32 = arith.constant 0 : i32
    %158 = vector.broadcast %c0_i32 : i32 to vector<8x128xi32>
    %159 = arith.cmpi eq, %156, %158 : vector<8x128xi32>
    %c0_i32_66 = arith.constant 0 : i32
    %160 = vector.broadcast %c0_i32_66 : i32 to vector<8x128xi32>
    %161 = arith.cmpi eq, %157, %160 : vector<8x128xi32>
    %162 = arith.andi %159, %161 : vector<8x128xi1>
    %cst_67 = arith.constant 0.000000e+00 : f32
    %163 = vector.shape_cast %114 : vector<1x1xf32> to vector<1x1xf32>
    %164 = vector.broadcast %163 : vector<1x1xf32> to vector<8x128xf32>
    %165 = vector.broadcast %cst_67 : f32 to vector<8x128xf32>
    %166 = arith.select %162, %164, %165 : vector<8x128xi1>, vector<8x128xf32>
    %c0_i32_68 = arith.constant 0 : i32
    %167 = vector.broadcast %c0_i32_68 : i32 to vector<8x128xi32>
    %168 = arith.cmpi eq, %156, %167 : vector<8x128xi32>
    %c1_i32 = arith.constant 1 : i32
    %169 = vector.broadcast %c1_i32 : i32 to vector<8x128xi32>
    %170 = arith.cmpi eq, %157, %169 : vector<8x128xi32>
    %171 = arith.andi %168, %170 : vector<8x128xi1>
    %cst_69 = arith.constant 0.000000e+00 : f32
    %172 = vector.shape_cast %155 : vector<1x1xf32> to vector<1x1xf32>
    %173 = vector.broadcast %172 : vector<1x1xf32> to vector<8x128xf32>
    %174 = vector.broadcast %cst_69 : f32 to vector<8x128xf32>
    %175 = arith.select %171, %173, %174 : vector<8x128xi1>, vector<8x128xf32>
    %176 = arith.addf %166, %175 : vector<8x128xf32>
    %c0_70 = arith.constant 0 : index
    %c0_71 = arith.constant 0 : index
    %c0_72 = arith.constant 0 : index
    %177 = vector.load %arg15[%c0_70, %c0_71, %c0_72] : memref<1x8x128xf32, #tpu.memory_space<vmem>>, vector<1x8x128xf32>
    %178 = vector.shape_cast %177 : vector<1x8x128xf32> to vector<8x128xf32>
    %179 = vector.shape_cast %176 : vector<8x128xf32> to vector<1x8x128xf32>
    tpu.vector_store %arg15[%c0_70, %c0_71, %c0_72], %179 {strides = array<i32>} : memref<1x8x128xf32, #tpu.memory_space<vmem>>, vector<1x8x128xf32>,
    return
  }
  func.func @transform_0(%arg0: i32) -> (i32, i32, i32) {
    %c0_i32 = arith.constant 0 : i32
    %c0_i32_0 = arith.constant 0 : i32
    %c0_i32_1 = arith.constant 0 : i32
    return %arg0, %c0_i32, %c0_i32_0 : i32, i32, i32
  }
  func.func @transform_1(%arg0: i32) -> (i32, i32, i32) {
    %c0_i32 = arith.constant 0 : i32
    %c0_i32_0 = arith.constant 0 : i32
    %c0_i32_1 = arith.constant 0 : i32
    return %arg0, %c0_i32, %c0_i32_0 : i32, i32, i32
  }
  func.func @transform_2(%arg0: i32) -> (i32, i32, i32) {
    %c0_i32 = arith.constant 0 : i32
    %c0_i32_0 = arith.constant 0 : i32
    %c0_i32_1 = arith.constant 0 : i32
    return %arg0, %c0_i32, %c0_i32_0 : i32, i32, i32
  }
  func.func @transform_3(%arg0: i32) -> (i32, i32) {
    %c0_i32 = arith.constant 0 : i32
    %c0_i32_0 = arith.constant 0 : i32
    %c0_i32_1 = arith.constant 0 : i32
    return %c0_i32, %c0_i32_0 : i32, i32
  }
  func.func @transform_4(%arg0: i32) -> (i32, i32) {
    %c0_i32 = arith.constant 0 : i32
    %c0_i32_0 = arith.constant 0 : i32
    %c0_i32_1 = arith.constant 0 : i32
    return %c0_i32, %c0_i32_0 : i32, i32
  }
  func.func @transform_5(%arg0: i32) -> (i32, i32) {
    %c0_i32 = arith.constant 0 : i32
    %c0_i32_0 = arith.constant 0 : i32
    %c0_i32_1 = arith.constant 0 : i32
    return %c0_i32, %c0_i32_0 : i32, i32
  }
  func.func @transform_6(%arg0: i32) -> (i32, i32) {
    %c0_i32 = arith.constant 0 : i32
    %c0_i32_0 = arith.constant 0 : i32
    %c0_i32_1 = arith.constant 0 : i32
    return %c0_i32, %c0_i32_0 : i32, i32
  }
  func.func @transform_7(%arg0: i32) -> (i32, i32) {
    %c0_i32 = arith.constant 0 : i32
    %c0_i32_0 = arith.constant 0 : i32
    %c0_i32_1 = arith.constant 0 : i32
    return %c0_i32, %c0_i32_0 : i32, i32
  }
  func.func @transform_8(%arg0: i32) -> (i32, i32) {
    %c0_i32 = arith.constant 0 : i32
    %c0_i32_0 = arith.constant 0 : i32
    %c0_i32_1 = arith.constant 0 : i32
    return %c0_i32, %c0_i32_0 : i32, i32
  }
  func.func @transform_9(%arg0: i32) -> (i32, i32) {
    %c0_i32 = arith.constant 0 : i32
    %c0_i32_0 = arith.constant 0 : i32
    %c0_i32_1 = arith.constant 0 : i32
    return %c0_i32, %c0_i32_0 : i32, i32
  }
  func.func @transform_10(%arg0: i32) -> (i32, i32) {
    %c0_i32 = arith.constant 0 : i32
    %c0_i32_0 = arith.constant 0 : i32
    %c0_i32_1 = arith.constant 0 : i32
    return %c0_i32, %c0_i32_0 : i32, i32
  }
  func.func @transform_11(%arg0: i32) -> (i32, i32) {
    %c0_i32 = arith.constant 0 : i32
    %c0_i32_0 = arith.constant 0 : i32
    %c0_i32_1 = arith.constant 0 : i32
    return %c0_i32, %c0_i32_0 : i32, i32
  }
  func.func @transform_12(%arg0: i32) -> (i32, i32) {
    %c0_i32 = arith.constant 0 : i32
    %c0_i32_0 = arith.constant 0 : i32
    %c0_i32_1 = arith.constant 0 : i32
    return %c0_i32, %c0_i32_0 : i32, i32
  }
  func.func @transform_13(%arg0: i32) -> (i32, i32, i32) {
    %c0_i32 = arith.constant 0 : i32
    %c0_i32_0 = arith.constant 0 : i32
    %c0_i32_1 = arith.constant 0 : i32
    return %arg0, %c0_i32, %c0_i32_0 : i32, i32, i32
  }
  func.func @transform_14(%arg0: i32) -> (i32, i32, i32) {
    %c0_i32 = arith.constant 0 : i32
    %c0_i32_0 = arith.constant 0 : i32
    %c0_i32_1 = arith.constant 0 : i32
    return %arg0, %c0_i32, %c0_i32_0 : i32, i32, i32
  }
}

</mosaic_0001>

<bundles_post_ra>
// kernel: tpu_custom_call.1
= control target key start
LH: loop header
LB: loop body
LE: loop exit
PB: predicated region body
PF: predicated region fallthrough
CT: control target
= control target key end

     0   :  { %20 = vsyncpa [#allocation3], 0  ;;  %v1292_v2 = vmov 0   ;;  %s1594_s0 = inlined_call_operand.vmem [shape: bf16[1,16,16], index: 0, kind: input, shape index: {}]   ;;  %s1595_s1 = inlined_call_operand.vmem [shape: f32[1,16,8], index: 1, kind: input, shape index: {}]   ;;  %s1596_s2 = inlined_call_operand.vmem [shape: f32[1,16,1], index: 2, kind: input, shape index: {}]   ;;  %s1597_s3 = inlined_call_operand.vmem [shape: f32[16,32], index: 3, kind: input, shape index: {}]   ;;  %s1598_s4 = inlined_call_operand.vmem [shape: f32[1,32], index: 4, kind: input, shape index: {}]   ;;  %s1599_s5 = inlined_call_operand.vmem [shape: f32[64,16], index: 5, kind: input, shape index: {}]   ;;  %s1600_s6 = inlined_call_operand.vmem [shape: f32[1,16], index: 6, kind: input, shape index: {}]   ;;  %s1601_s7 = inlined_call_operand.vmem [shape: f32[16,4], index: 7, kind: input, shape index: {}]   ;;  %s1602_s8 = inlined_call_operand.vmem [shape: f32[1,4], index: 8, kind: input, shape index: {}]   ;;  %s1603_s9 = inlined_call_operand.vmem [shape: f32[16,32], index: 9, kind: input, shape index: {}]   ;;  %s1604_s10 = inlined_call_operand.vmem [shape: f32[1,32], index: 10, kind: input, shape index: {}]   ;;  %s1605_s11 = inlined_call_operand.vmem [shape: f32[32,8], index: 11, kind: input, shape index: {}]   ;;  %s1606_s12 = inlined_call_operand.vmem [shape: f32[1,8], index: 12, kind: input, shape index: {}]   ;;  %s1607_s13 = inlined_call_operand.hbm [shape: f32[1,4,16], index: 13, kind: output, shape index: {0}]   ;;  %s1608_s14 = inlined_call_operand.hbm [shape: f32[1,8,128], index: 14, kind: output, shape index: {1}]  }
   0x1   :  { %v1379_v0 = vld [vmem:[%s1596_s2] sm:$0xff]  ;;  %v1384_v1 = vld [vmem:[%s1596_s2 + $0x8] sm:$0xff]  ;;  %1202 = vset.pattern.permute.xlu0 %v1292_v2  ;;  %1208 = vset.pattern.permute.xlu1 %v1292_v2 }
   0x2   :  { %1210 = vrsqrt.f32 %v1379_v0 }
   0x3   :  { %21 = vsyncpa [#allocation5], 0  ;;  %1212 = vrsqrt.f32 %v1384_v1  ;;  %vm55_vm0 = vcmp.gt.f32.partialorder %v1379_v0, 0.0  ;;  %vm56_vm1 = vcmp.gt.f32.partialorder %v1384_v1, 0.0  ;;  %v1293_v7 = vmov 0.0   ;;  %v1396_v8 = vld [vmem:[%s1595_s1] sm:$0xff] }
   0x4   :  { %1074 = vmatprep.subr.bf16.mxu0 %v1293_v7  ;;  %vm1294_vm2 = vmmov 0   ;;  %s1295_s18 = smov 8   ;;  %v1402_v9 = vld [vmem:[%s1595_s1 + $0x8] sm:$0xff]  ;;  %v1416_v15 = vld [vmem:[%s1594_s0] sm:$0xff]   ;;  %vm79_vm3 = vcmask 130048   ;;  %vm134_vm4 = vcmask 64512  }
   0x5   :  { %1076 = vmatprep.mubr.msk.bf16.mxu0 %vm1294_vm2, %v1293_v7  ;;  %128 = vrot.lane.b32.xlu1 %v1396_v8, %s1295_s18  ;;  %v137_v16 = vld [vmem:[%s1597_s3] sm:$0xff]  ;;  %v138_v17 = vld [vmem:[%s1597_s3 + $0x8] sm:$0xff]  ;;  %v300_v38 = vld [vmem:[%s1599_s5 + $0x10] sm:$0xff]  ;;  %s1296_s20 = smov 32   ;;  %vm295_vm7 = vcmask 261120   ;;  %vm313_vm8 = vcmask 523264  }
   0x6   :  { %v1149_v18 = vpack.c.bf16 %v138_v17, %v137_v16  ;;  %v1012_v29 = vld [vmem:[%s1598_s4] ss:$0 sm:$0xff]  ;;  %v299_v37 = vld [vmem:[%s1599_s5 + $0x8] sm:$0xff]  ;;  %v301_v40 = vld [vmem:[%s1599_s5 + $0x18] sm:$0xff]  ;;  %vm499_vm11 = vcmask 31744   ;;  %s1297_s27 = smov 4  }
   0x7   :  { %v298_v36 = vld [vmem:[%s1599_s5] sm:$0xff]  ;;  %v1157_v41 = vpack.c.bf16 %v301_v40, %v300_v38  ;;  %v303_v43 = vld [vmem:[%s1599_s5 + $0x28] sm:$0xff]  ;;  %v304_v58 = vld [vmem:[%s1599_s5 + $0x30] sm:$0xff]  ;;  %s1298_s15 = smov 124   ;;  %vm624_vm12 = vcmask 7168   ;;  %vm678_vm13 = vcmask 24576  }
   0x8   :  { %1150 = vmatprep.subr.bf16.mxu1 %v1149_v18  ;;  %v1153_v39 = vpack.c.bf16 %v299_v37, %v298_v36  ;;  %v302_v42 = vld [vmem:[%s1599_s5 + $0x20] sm:$0xff]  ;;  %v305_v59 = vld [vmem:[%s1599_s5 + $0x38] sm:$0xff]  ;;  %v410_v16 = vld [vmem:[%s1601_s7 + $0x8] sm:$0xff] }
   0x9   :  { %130 = vrot.lane.b32.xlu1 %v1402_v9, %s1295_s18  ;;  %1152 = vmatpush3.bf16.msra.mxu1 %v1149_v18  ;;  %v1161_v45 = vpack.c.bf16 %v303_v43, %v302_v42  ;;  %v1165_v60 = vpack.c.bf16 %v305_v59, %v304_v58  ;;  %v1018_v18 = vld [vmem:[%s1600_s6] ss:$0 sm:$0xff] }
   0xa   :  { %1087 = vmatprep.subr.bf16.mxu1 %v1293_v7  ;;  %v1023_v38 = vld [vmem:[%s1602_s8] ss:$0 sm:$0xff] }
   0xc   :  { %v1211_v3 = vpop.eup %1210 }
   0xd   :  { %v1213_v4 = vpop.eup %1212  ;;  %v59_v5 = vsel %vm55_vm0, %v1211_v3, 0.0  ;;  %vm554_vm0 = vcmask 125952  }
   0xe   :  { %63 = vperm.xlu0 %1202, %v59_v5   ;;  %v60_v6 = vsel %vm56_vm1, %v1213_v4, 0.0 }
  0x12   :  { %68 = vperm.xlu0 %1202, %v60_v6  }
  0x77   :  { %v129_v19 = vpop.permute.xlu1 %128 }
  0x7b   :  { %v131_v24 = vpop.permute.xlu1 %130 }
  0x8d   :  { %v1405_v10 = vpop.permute.xlu0 %63 }
  0x8e   :  { %v71_v12 = vmul.f32 %v1405_v10, %v1396_v8 }
  0x91   :  { %v1407_v11 = vpop.permute.xlu0 %68 }
  0x92   :  { %v72_v13 = vmul.f32 %v1407_v11, %v1402_v9 }
  0x94   :  { %v73_v14 = vpack.c.bf16 %v72_v13, %v71_v12 }
  0x96   :  { %1075 = vmatpush3.bf16.msra.mxu0 %v73_v14  ;;  %v409_v14 = vld [vmem:[%s1601_s7] sm:$0xff] }
  0x97   :  { %1154 = vmatprep.subr.bf16.mxu0 %v1153_v39  ;;  %v1169_v17 = vpack.c.bf16 %v410_v16, %v409_v14 }
  0x99   :  { %1077 = vmatmul.mubr.msk.bf16.vlgmr.msra.gmra.mrb[0].mxu0 %vm79_vm3, %v1416_v15 }
  0x9a   :  { %1156 = vmatpush3.bf16.msra.mxu0 %v1153_v39 }
  0x9b   :  { %1158 = vmatprep.subr.bf16.mxu0 %v1157_v41 }
  0x9e   :  { %1160 = vmatpush3.bf16.msra.mxu0 %v1157_v41 }
  0x9f   :  { %1162 = vmatprep.subr.bf16.mxu0 %v1161_v45 }
  0xa2   :  { %1164 = vmatpush3.bf16.msra.mxu0 %v1161_v45 }
  0xa3   :  { %1166 = vmatprep.subr.bf16.mxu0 %v1165_v60 }
  0xa6   :  { %1168 = vmatpush3.bf16.msra.mxu0 %v1165_v60 }
 0x16c   :  { %v117_v20 = vpop.f32.mrb[0].mxu0 }
 0x16d   :  { %v124_v21 = vmul.f32 %v117_v20, %v1405_v10  ;;  %v1078_v22 = vpop.f32.mrb[1].mxu0 }
 0x16e   :  { %v120_v23 = vpop.f32.mrb[2].mxu0 }
 0x16f   :  { %v125_v25 = vmul.f32 %v120_v23, %v1407_v11  ;;  %v1079_v26 = vpop.f32.mrb[3].mxu0  ;;  %v135_v27 = vsel %vm134_vm4, %v124_v21, %v129_v19 }
 0x170   :  { %1084 = vmatprep.mubr.msk.f32.mxu1 %vm79_vm3, %v135_v27 }
 0x171   :  { %v136_v28 = vsel %vm134_vm4, %v125_v25, %v131_v24 }
 0x172   :  { %1085 = vmatmul.mubr.msk.f32.vlgmr.msra.gmra.mrb[0].mxu1 %vm79_vm3, %v136_v28 }
 0x173   :  { %1089 = vmatprep.mubr.msk.bf16.mxu1 %vm1294_vm2, %v1293_v7 }
 0x245   :  { %v1086_v30 = vpop.f32.mrb[0].mxu1 }
 0x246   :  { %v224_v31 = vadd.f32 %v1086_v30, %v1012_v29  ;;  %v218_v32 = vpop.f32.mrb[1].mxu1 }
 0x247   :  { %v219_v33 = vadd.f32 %v1012_v29, %v218_v32 }
 0x248   :  { %v231_v34 = vmul.f32 1.442695, %v224_v31  ;;  %vm228_vm5 = vcmp.gt.f32.partialorder %v224_v31, 0.0 }
 0x249   :  { %v229_v35 = vmul.f32 1.442695, %v219_v33  ;;  %vm227_vm6 = vcmp.gt.f32.partialorder %v219_v33, 0.0 }
 0x24a   :  { %1214 = vpow2.f32 %v231_v34 }
 0x24b   :  { %1216 = vpow2.f32 %v229_v35 }
 0x254   :  { %v1215_v44 = vpop.eup %1214 }
 0x255   :  { %v1217_v46 = vpop.eup %1216  ;;  %v1016_v47 = vadd.f32 -1.0, %v1215_v44 }
 0x256   :  { %v1015_v48 = vadd.f32 -1.0, %v1217_v46 }
 0x257   :  { %v236_v49 = vmul.f32 1.6732632, %v1016_v47 }
 0x258   :  { %v235_v50 = vmul.f32 1.6732632, %v1015_v48 }
 0x259   :  { %v238_v51 = vsel %vm228_vm5, %v224_v31, %v236_v49 }
 0x25a   :  { %v240_v52 = vmul.f32 1.050701, %v238_v51  ;;  %v237_v53 = vsel %vm227_vm6, %v219_v33, %v235_v50 }
 0x25b   :  { %v239_v54 = vmul.f32 1.050701, %v237_v53 }
 0x25c   :  { %291 = vrot.lane.b32.xlu1 %v240_v52, %s1296_s20  ;;  %v242_v55 = vmul.f32 %v240_v52, %v1407_v11 }
 0x25d   :  { %289 = vrot.lane.b32.xlu0 %v239_v54, %s1296_s20  ;;  %v241_v56 = vmul.f32 %v239_v54, %v1405_v10 }
 0x25f   :  { %v243_v57 = vpack.c.bf16 %v242_v55, %v241_v56 }
 0x261   :  { %1088 = vmatpush3.bf16.msra.mxu1 %v243_v57 }
 0x262   :  { %1170 = vmatprep.subr.bf16.mxu1 %v1169_v17 }
 0x264   :  { %1090 = vmatmul.mubr.msk.bf16.vlgmr.msra.gmra.mrb[4].mxu1 %vm79_vm3, %v1416_v15 }
 0x265   :  { %1172 = vmatpush3.bf16.msra.mxu1 %v1169_v17 }
 0x266   :  { %1119 = vmatprep.subr.bf16.mxu1 %v1293_v7 }
 0x2ce   :  { %v292_v12 = vpop.permute.xlu1 %291 }
 0x2cf   :  { %v290_v2 = vpop.permute.xlu0 %289 }
 0x337   :  { %v278_v61 = vpop.f32.mrb[4].mxu1 }
 0x338   :  { %v285_v62 = vmul.f32 %v278_v61, %v1405_v10  ;;  %v1091_v63 = vpop.f32.mrb[5].mxu1 }
 0x339   :  { %v281_v3 = vpop.f32.mrb[6].mxu1 }
 0x33a   :  { %v286_v4 = vmul.f32 %v281_v3, %v1407_v11  ;;  %v1092_v5 = vpop.f32.mrb[7].mxu1  ;;  %v296_v6 = vsel %vm295_vm7, %v285_v62, %v290_v2 }
 0x33b   :  { %1109 = vmatprep.mubr.msk.f32.mxu0 %vm313_vm8, %v296_v6  ;;  %v694_v5 = vld [vmem:[%s1603_s9] sm:$0xff]  ;;  %v695_v6 = vld [vmem:[%s1603_s9 + $0x8] sm:$0xff] }
 0x33c   :  { %v297_v13 = vsel %vm295_vm7, %v286_v4, %v292_v12  ;;  %v1173_v12 = vpack.c.bf16 %v695_v6, %v694_v5 }
 0x33d   :  { %1110 = vmatmul.mubr.msk.f32.vlgmr.msra.gmra.mrb[4].mxu0 %vm313_vm8, %v297_v13 }
 0x33e   :  { %1174 = vmatprep.subr.bf16.mxu0 %v1173_v12 }
 0x33f   :  { %1176 = vmatpush3.bf16.msra.mxu0 %v1173_v12 }
 0x340   :  { %1132 = vmatprep.subr.bf16.mxu0 %v1293_v7 }
 0x410   :  { %v1111_v19 = vpop.f32.mrb[4].mxu0 }
 0x411   :  { %v392_v20 = vadd.f32 %v1111_v19, %v1018_v18  ;;  %v386_v21 = vpop.f32.mrb[5].mxu0 }
 0x412   :  { %v387_v22 = vadd.f32 %v1018_v18, %v386_v21 }
 0x413   :  { %v399_v23 = vmul.f32 1.442695, %v392_v20  ;;  %vm396_vm9 = vcmp.gt.f32.partialorder %v392_v20, 0.0 }
 0x414   :  { %v397_v24 = vmul.f32 1.442695, %v387_v22  ;;  %vm395_vm10 = vcmp.gt.f32.partialorder %v387_v22, 0.0 }
 0x415   :  { %1218 = vpow2.f32 %v399_v23 }
 0x416   :  { %1220 = vpow2.f32 %v397_v24 }
 0x41f   :  { %v1219_v25 = vpop.eup %1218 }
 0x420   :  { %v1221_v26 = vpop.eup %1220  ;;  %v1022_v27 = vadd.f32 -1.0, %v1219_v25  ;;  %v625_v25 = vsel %vm624_vm12, %v1379_v0, 0.0 }
 0x421   :  { %v1021_v28 = vadd.f32 -1.0, %v1221_v26  ;;  %v626_v26 = vsel %vm624_vm12, %v1384_v1, 0.0 }
 0x422   :  { %v404_v29 = vmul.f32 1.6732632, %v1022_v27  ;;  %v627_v27 = vadd.f32 %v626_v26, %v625_v25 }
 0x423   :  { %v403_v30 = vmul.f32 1.6732632, %v1021_v28 }
 0x424   :  { %v406_v31 = vsel %vm396_vm9, %v392_v20, %v404_v29 }
 0x425   :  { %v1480_v32 = vmul.f32 1.050701, %v406_v31  ;;  %v405_v33 = vsel %vm395_vm10, %v387_v22, %v403_v30 }
 0x426   :  { %v1482_v34 = vmul.f32 1.050701, %v405_v33 }
 0x427   :  { %v557_v35 = vmul.f32 %v1480_v32, %v1407_v11  ;;  %v611_v31 = vmul.f32 2.0, %v1480_v32 }
 0x428   :  { %1116 = vmatprep.mubr.msk.f32.mxu1 %vm79_vm3, %v1482_v34  ;;  %v556_v36 = vmul.f32 %v1482_v34, %v1405_v10  ;;  %v610_v28 = vmul.f32 2.0, %v1482_v34 }
 0x429   :  { %1117 = vmatmul.mubr.msk.f32.vlgmr.msra.gmra.mrb[2].mxu1 %vm79_vm3, %v1480_v32 }
 0x42a   :  { %v1203_v37 = vpack.i.bf16 %v557_v35, %v556_v36  ;;  %1121 = vmatprep.mubr.msk.bf16.mxu1 %vm1294_vm2, %v1293_v7 }
 0x4fc   :  { %v1118_v39 = vpop.f32.mrb[2].mxu1 }
 0x4fd   :  { %v496_v40 = vadd.f32 %v1118_v39, %v1023_v38  ;;  %v490_v41 = vpop.f32.mrb[3].mxu1 }
 0x4fe   :  { %v491_v42 = vadd.f32 %v1023_v38, %v490_v41 }
 0x4ff   :  { %v503_v43 = vsel %vm499_vm11, %v496_v40, -inf }
 0x500   :  { %504 = vmax.xlane.f32.xlu1 %v503_v43  ;;  %v500_v44 = vsel %vm499_vm11, %v491_v42, -inf }
 0x501   :  { %501 = vmax.xlane.f32.xlu0 %v500_v44 }
 0x511   :  { %1204 = vrot.lane.b32.xlu1 %v1203_v37, %s1297_s27 }
 0x58d   :  { %v505_v45 = vpop.xlane.xlu1 %504 }
 0x58e   :  { %v507_v46 = vsub.f32 %v496_v40, %v505_v45  ;;  %v502_v47 = vpop.xlane.xlu0 %501 }
 0x58f   :  { %v506_v48 = vsub.f32 %v491_v42, %v502_v47 }
 0x590   :  { %v510_v49 = vmul.f32 1.442695, %v507_v46 }
 0x591   :  { %v508_v50 = vmul.f32 1.442695, %v506_v48  ;;  %v1205_v58 = vpop.permute.xlu1 %1204 }
 0x592   :  { %v1207_v61 = vunpack.i.h.bf16 %v1205_v58  ;;  %v1206_v62 = vunpack.i.l.bf16 %v1205_v58 }
 0x593   :  { %1222 = vpow2.f32 %v508_v50 }
 0x594   :  { %1224 = vpow2.f32 %v510_v49 }
 0x59d   :  { %v1223_v51 = vpop.eup %1222 }
 0x59e   :  { %v512_v52 = vsel %vm499_vm11, %v1223_v51, 0.0  ;;  %v1225_v53 = vpop.eup %1224 }
 0x59f   :  { %513 = vadd.xlane.f32.xlu0 %v512_v52  ;;  %v515_v54 = vsel %vm499_vm11, %v1225_v53, 0.0 }
 0x5a3   :  { %516 = vadd.xlane.f32.xlu0 %v515_v54 }
 0x62c   :  { %v514_v55 = vpop.xlane.xlu0 %513 }
 0x62d   :  { %1226 = vrcp.f32 %v514_v55 }
 0x630   :  { %v517_v56 = vpop.xlane.xlu0 %516 }
 0x631   :  { %1228 = vrcp.f32 %v517_v56 }
 0x637   :  { %v1227_v57 = vpop.eup %1226 }
 0x638   :  { %v1501_v59 = vmul.f32 %v1227_v57, %v1223_v51 }
 0x63a   :  { %v566_v2 = vsel %vm499_vm11, %v1501_v59, %v1206_v62  ;;  %v849_v62 = vld [vmem:[%s1605_s11 + $0x8] sm:$0xff] }
 0x63b   :  { %v1229_v60 = vpop.eup %1228 }
 0x63c   :  { %v1503_v63 = vmul.f32 %v1229_v60, %v1225_v53 }
 0x63e   :  { %v567_v3 = vsel %vm499_vm11, %v1503_v63, %v1207_v61  ;;  %v848_v61 = vld [vmem:[%s1605_s11] sm:$0xff] }
 0x63f   :  { %v568_v4 = vpack.c.bf16 %v567_v3, %v566_v2  ;;  %v1177_v2 = vpack.c.bf16 %v849_v62, %v848_v61 }
 0x641   :  { %1120 = vmatpush3.bf16.msra.mxu1 %v568_v4 }
 0x642   :  { %1178 = vmatprep.subr.bf16.mxu1 %v1177_v2 }
 0x644   :  { %1122 = vmatmul.mubr.msk.bf16.vlgmr.msra.gmra.mrb[8].mxu1 %vm79_vm3, %v1416_v15 }
 0x645   :  { %1180 = vmatpush3.bf16.msra.mxu1 %v1177_v2 }
 0x717   :  { %v603_v13 = vpop.f32.mrb[8].mxu1 }
 0x718   :  { %v612_v14 = vmul.f32 %v603_v13, %v1405_v10  ;;  %v641_v16 = vmul.f32 %v603_v13, %v1501_v59  ;;  %v1123_v17 = vpop.f32.mrb[9].mxu1 }
 0x719   :  { %v606_v18 = vpop.f32.mrb[10].mxu1 }
 0x71a   :  { %v613_v19 = vmul.f32 %v606_v18, %v1407_v11  ;;  %v642_v20 = vmul.f32 %v606_v18, %v1503_v63  ;;  %616 = vrot.lane.b32.xlu0 %v612_v14, %s1298_s15  ;;  %v1124_v21 = vpop.f32.mrb[11].mxu1  ;;  %v643_v22 = vsel %vm499_vm11, %v641_v16, 0.0 }
 0x71c   :  { %618 = vrot.lane.b32.xlu1 %v613_v19, %s1298_s15  ;;  %v644_v23 = vsel %vm499_vm11, %v642_v20, 0.0 }
 0x71d   :  { %v645_v24 = vadd.f32 %v644_v23, %v643_v22 }
 0x71e   :  { %663 = vperm.xlu0 %1202, %v1384_v1  }
 0x720   :  { %658 = vperm.xlu1 %1208, %v1379_v0  }
 0x73d   :  { %646 = vadd.xlane.f32.xlu0 %v645_v24 }
 0x744   :  { %628 = vadd.xlane.f32.xlu1 %v627_v27 }
 0x78c   :  { %v617_v29 = vpop.permute.xlu0 %616 }
 0x78d   :  { %v622_v30 = vsub.f32 %v610_v28, %v617_v29 }
 0x78e   :  { %v619_v33 = vpop.permute.xlu1 %618 }
 0x78f   :  { %v623_v35 = vsub.f32 %v611_v31, %v619_v33  ;;  %1129 = vmatprep.mubr.msk.f32.mxu0 %vm79_vm3, %v622_v30 }
 0x791   :  { %1130 = vmatmul.mubr.msk.f32.vlgmr.msra.gmra.mrb[6].mxu0 %vm79_vm3, %v623_v35 }
 0x792   :  { %1134 = vmatprep.mubr.msk.bf16.mxu0 %vm1294_vm2, %v1293_v7 }
 0x79d   :  { %v664_v0 = vpop.permute.xlu0 %663 }
 0x79e   :  { %v667_v1 = vmul.f32 %v664_v0, %v1503_v63  ;;  %v850_v0 = vld [vmem:[%s1605_s11 + $0x10] sm:$0xff] }
 0x79f   :  { %v659_v36 = vpop.permute.xlu1 %658 }
 0x7a0   :  { %v666_v37 = vmul.f32 %v659_v36, %v1501_v59  ;;  %v669_v34 = vsel %vm499_vm11, %v667_v1, 0.0  ;;  %v851_v1 = vld [vmem:[%s1605_s11 + $0x18] sm:$0xff] }
 0x7a1   :  { %v1181_v36 = vpack.c.bf16 %v851_v1, %v850_v0 }
 0x7a2   :  { %v668_v38 = vsel %vm499_vm11, %v666_v37, 0.0 }
 0x7a3   :  { %v670_v32 = vadd.f32 %v669_v34, %v668_v38  ;;  %1182 = vmatprep.subr.bf16.mxu1 %v1181_v36 }
 0x7a4   :  { %1184 = vmatpush3.bf16.msra.mxu1 %v1181_v36 }
 0x7a5   :  { %v671_v39 = vrot.slane %v670_v32, 4 }
 0x7a7   :  { %v672_v40 = vadd.f32 %v671_v39, %v670_v32 }
 0x7a9   :  { %v673_v41 = vrot.slane %v672_v40, 2 }
 0x7ab   :  { %v674_v42 = vadd.f32 %v673_v41, %v672_v40 }
 0x7ad   :  { %v675_v43 = vrot.slane %v674_v42, 1 }
 0x7af   :  { %v676_v44 = vadd.f32 %v675_v43, %v674_v42 }
 0x7b1   :  { %v677_v45 = vmul.f32 %v676_v44, %v676_v44  ;;  %v1033_v44 = vld [vmem:[%s1606_s12] ss:$0 sm:$0xff]  ;;  %s1299_s12 = smov [#allocation2]  }
 0x7b2   :  { %s988_s1 = sshll.u32 %s1299_s12, 4  ;;  %s989_s1 = int_to_ptr.vmem [resolvable:$true] %s988_s1 }
 0x7b3   :  { %v679_v7 = vsel %vm678_vm13, %v677_v45, 0.0  ;;  %s1244_s23 = scalar_lea.vmem %s989_s1, 64  ;;  %p1249_p1 = scmp.lt.s32.totalorder %s989_s1, %s989_s1 }
 0x7b4   :  { %680 = vadd.xlane.f32.xlu0 %v679_v7  ;;  %p1245_p0 = scmp.ne.s32.totalorder %s989_s1, %s1244_s23  ;;  %p1250_p2 = scmp.lt.s32.totalorder %s1244_s23, %s1244_s23 }
 0x7b6   :  { %p1251_p3 = por %p1250_p2, %p1249_p1 }
 0x7b8   :  { %p1252_p4 = pnand %p1251_p3, %p1245_p0 }
 0x7ca   :  { %v647_v46 = vpop.xlane.xlu0 %646 }
 0x7cb   :  { %v648_v47 = vrot.slane %v647_v46, 4 }
 0x7cd   :  { %v649_v48 = vadd.f32 %v648_v47, %v647_v46 }
 0x7cf   :  { %v650_v49 = vrot.slane %v649_v48, 2 }
 0x7d1   :  { %v629_v50 = vpop.xlane.xlu1 %628  ;;  %v651_v53 = vadd.f32 %v650_v49, %v649_v48 }
 0x7d2   :  { %v630_v51 = vrot.slane %v629_v50, 4 }
 0x7d3   :  { %v652_v56 = vrot.slane %v651_v53, 1 }
 0x7d4   :  { %v631_v52 = vadd.f32 %v630_v51, %v629_v50 }
 0x7d5   :  { %v653_v60 = vadd.f32 %v652_v56, %v651_v53 }
 0x7d6   :  { %v632_v54 = vrot.slane %v631_v52, 2 }
 0x7d8   :  { %v633_v55 = vadd.f32 %v632_v54, %v631_v52 }
 0x7da   :  { %v634_v57 = vrot.slane %v633_v55, 1 }
 0x7dc   :  { %v635_v58 = vadd.f32 %v634_v57, %v633_v55 }
 0x7de   :  { %1185 = vpush %v635_v58 }
 0x7df   :  { %1187 = vpush %v653_v60 }
 0x7e1   :  { %522 = vxpose.xlu0.b32.start [1/2] (short) (narrow) %v1501_v59, 8 }
 0x7e5   :  { %523 = vxpose.xlu0.b32.end [2/2] (short) (narrow) %v1503_v63, 8  ;;  %v1027_v63 = vld [vmem:[%s1604_s10] ss:$0 sm:$0xff] }
 0x841   :  { %v681_v3 = vpop.xlane.xlu0 %680 }
 0x842   :  { %v682_v4 = vrot.slane %v681_v3, 4 }
 0x844   :  { %v683_v5 = vadd.f32 %v682_v4, %v681_v3 }
 0x846   :  { %v684_v6 = vrot.slane %v683_v5, 2 }
 0x848   :  { %v685_v12 = vadd.f32 %v684_v6, %v683_v5 }
 0x84a   :  { %v686_v13 = vrot.slane %v685_v12, 1 }
 0x84c   :  { %v687_v59 = vadd.f32 %v686_v13, %v685_v12 }
 0x84e   :  { %1189 = vpush %v687_v59 }
 0x861   :  { %v538_v62 = vpop.trf.xlu0 }
 0x862   :  { %555 = vst.msk [vmem:[#allocation2] sm:$0xf] %vm554_vm0, %v538_v62 }
 0x864   :  { %v1131_v14 = vpop.f32.mrb[6].mxu0 }
 0x865   :  { %v781_v16 = vadd.f32 %v1131_v14, %v1027_v63  ;;  %v775_v17 = vpop.f32.mrb[7].mxu0 }
 0x866   :  { %v776_v18 = vadd.f32 %v1027_v63, %v775_v17 }
 0x867   :  { %v788_v19 = vmul.f32 1.442695, %v781_v16  ;;  %vm785_vm14 = vcmp.gt.f32.partialorder %v781_v16, 0.0 }
 0x868   :  { %v786_v20 = vmul.f32 1.442695, %v776_v18  ;;  %vm784_vm15 = vcmp.gt.f32.partialorder %v776_v18, 0.0 }
 0x869   :  { %1230 = vpow2.f32 %v788_v19 }
 0x86a   :  { %1232 = vpow2.f32 %v786_v20 }
 0x873   :  { %v1231_v21 = vpop.eup %1230 }
 0x874   :  { %v1233_v22 = vpop.eup %1232  ;;  %v1031_v23 = vadd.f32 -1.0, %v1231_v21 }
 0x875   :  { %v1030_v24 = vadd.f32 -1.0, %v1233_v22 }
 0x876   :  { %v793_v25 = vmul.f32 1.6732632, %v1031_v23 }
 0x877   :  { %v792_v26 = vmul.f32 1.6732632, %v1030_v24 }
 0x878   :  { %v795_v27 = vsel %vm785_vm14, %v781_v16, %v793_v25 }
 0x879   :  { %v797_v28 = vmul.f32 1.050701, %v795_v27  ;;  %v794_v29 = vsel %vm784_vm15, %v776_v18, %v792_v26 }
 0x87a   :  { %v796_v30 = vmul.f32 1.050701, %v794_v29 }
 0x87b   :  { %v801_v31 = vmul.f32 %v797_v28, %v1407_v11  ;;  %v799_v41 = vmul.f32 2.0, %v797_v28 }
 0x87c   :  { %v800_v33 = vmul.f32 %v796_v30, %v1405_v10  ;;  %v798_v34 = vmul.f32 2.0, %v796_v30 }
 0x87e   :  { %v802_v35 = vpack.c.bf16 %v801_v31, %v800_v33 }
 0x880   :  { %1133 = vmatpush3.bf16.msra.mxu0 %v802_v35 }
 0x883   :  { %1135 = vmatmul.mubr.msk.bf16.vlgmr.msra.gmra.mrb[8].mxu0 %vm79_vm3, %v1416_v15 }
 0x956   :  { %v837_v37 = vpop.f32.mrb[8].mxu0 }
 0x957   :  { %v844_v38 = vmul.f32 %v837_v37, %v1405_v10  ;;  %v1136_v32 = vpop.f32.mrb[9].mxu0 }
 0x958   :  { %v840_v39 = vpop.f32.mrb[10].mxu0 }
 0x959   :  { %v846_v40 = vsub.f32 %v798_v34, %v844_v38  ;;  %v845_v15 = vmul.f32 %v840_v39, %v1407_v11  ;;  %v1137_v42 = vpop.f32.mrb[11].mxu0 }
 0x95b   :  { %v847_v43 = vsub.f32 %v799_v41, %v845_v15  ;;  %1146 = vmatprep.mubr.msk.f32.mxu1 %vm295_vm7, %v846_v40 }
 0x95d   :  { %1147 = vmatmul.mubr.msk.f32.vlgmr.msra.gmra.mrb[12].mxu1 %vm295_vm7, %v847_v43 }
 0xa30   :  { %v1148_v45 = vpop.f32.mrb[12].mxu1 }
 0xa31   :  { %v937_v7 = vadd.f32 %v1148_v45, %v1033_v44  ;;  %v931_v46 = vpop.f32.mrb[13].mxu1 }
 0xa32   :  { %v932_v10 = vadd.f32 %v1033_v44, %v931_v46 }
 0xa33   :  { %v1037_v47 = vmul.f32 -1.442695, %v937_v7 }
 0xa34   :  { %v1036_v48 = vmul.f32 -1.442695, %v932_v10 }
 0xa35   :  { %1234 = vpow2.f32 %v1037_v47 }
 0xa36   :  { %1236 = vpow2.f32 %v1036_v48 }
 0xa3f   :  { %v1235_v49 = vpop.eup %1234 }
 0xa40   :  { %v1237_v11 = vpop.eup %1236  ;;  %v947_v50 = vadd.f32 1.0, %v1235_v49 }
 0xa41   :  { %v946_v51 = vadd.f32 1.0, %v1237_v11 }
 0xa42   :  { %1238 = vrcp.f32 %v947_v50 }
 0xa43   :  { %1240 = vrcp.f32 %v946_v51 }
 0xa4c   :  { %v1239_v52 = vpop.eup %1238 }
 0xa4d   :  { %v1241_v53 = vpop.eup %1240  ;;  %v953_v54 = vsub.f32 %v1402_v9, %v1239_v52 }
 0xa4e   :  { %v952_v55 = vsub.f32 %v1396_v8, %v1241_v53 }
 0xa4f   :  { %v955_v56 = vmul.f32 %v953_v54, %v953_v54 }
 0xa50   :  { %v954_v57 = vmul.f32 %v952_v55, %v952_v55 }
 0xa51   :  { %v957_v58 = vsel %vm134_vm4, %v955_v56, 0.0 }
 0xa52   :  { %v956_v60 = vsel %vm134_vm4, %v954_v57, 0.0 }
 0xa53   :  { %v958_v61 = vadd.f32 %v957_v58, %v956_v60 }
 0xa55   :  { %959 = vadd.xlane.f32.xlu1 %v958_v61 }
 0xa56   :  { %1255 = shalt.err (!%p1252_p4)
}
 0xa57   :  { %s1256_s25 = scalar_lea.hbm %s1607_s13, 64 }
 0xa58   :  { %p1257_p5 = scmp.ne.s32.totalorder %s1607_s13, %s1256_s25  ;;  %p1260_p6 = scmp.lt.u32.totalorder %s1256_s25, %s1607_s13 }
 0xa5a   :  { %p1262_p7 = pnand %p1260_p6, %p1257_p5 }
 0xa5c   :  { %1265 = shalt.err (!%p1262_p7)
}
 0xa5d   :  { %991 = dma.vmem_to_hbm [thread:$0]  %s989_s1, 64, %s1607_s13, [#allocation3]   ;;  %v968_v14 = vlaneseq }
 0xa5e   :  { %s1186_s8 = spop %1185  ;;  %s1300_s15 = smov [#allocation4]  }
 0xa5f   :  { %s637_s28 = smul.f32 2.0, %s1186_s8  ;;  %s1188_s29 = spop %1187  ;;  %v969_v18 = vshrl.u32 %v968_v14, 7  ;;  %v971_v19 = vand.u32 127, %v968_v14 }
 0xa60   :  { %s1190_s30 = spop %1189  ;;  %v655_v16 = vstv %s1188_s29  ;;  %s998_s9 = sshll.u32 %s1300_s15, 4  ;;  %s999_s9 = int_to_ptr.vmem [resolvable:$true] %s998_s9 }
 0xa61   :  { %v638_v12 = vstv %s637_s28  ;;  %v689_v59 = vstv %s1190_s30  ;;  %vm972_vm1 = vcmp.eq.s32.totalorder %v969_v18, 0  ;;  %vm973_vm2 = vcmp.eq.s32.totalorder %v971_v19, 0  ;;  %s1266_s4 = scalar_lea.vmem %s999_s9, 128  ;;  %p1271_p9 = scmp.lt.s32.totalorder %s999_s9, %s999_s9 }
 0xa62   :  { %1242 = vrcp.f32 %v638_v12  ;;  %vm976_vm3 = vcmp.eq.s32.totalorder %v971_v19, 1  ;;  %vm974_vm4 = vmand %vm972_vm1, %vm973_vm2  ;;  %p1267_p8 = scmp.ne.s32.totalorder %s999_s9, %s1266_s4  ;;  %p1272_p10 = scmp.lt.s32.totalorder %s1266_s4, %s1266_s4 }
 0xa63   :  { %vm977_vm5 = vmand %vm972_vm1, %vm976_vm3 }
 0xa64   :  { %p1273_p11 = por %p1272_p10, %p1271_p9 }
 0xa66   :  { %p1274_p12 = pnand %p1273_p11, %p1267_p8 }
 0xa6c   :  { %v1243_v13 = vpop.eup %1242 }
 0xa6d   :  { %v690_v63 = vmul.f32 %v1243_v13, %v689_v59 }
 0xa6f   :  { %v691_v17 = vsub.f32 %v655_v16, %v690_v63 }
 0xa71   :  { %v692_v20 = vsub.f32 0.0, %v691_v17 }
 0xa73   :  { %v693_v21 = vmul.f32 %v1243_v13, %v692_v20 }
 0xa75   :  { %v975_v23 = vsel %vm974_vm4, %v693_v21, 0.0 }
 0xae2   :  { %v960_v8 = vpop.xlane.xlu1 %959 }
 0xae3   :  { %v961_v9 = vrot.slane %v960_v8, 4 }
 0xae5   :  { %v962_v2 = vadd.f32 %v961_v9, %v960_v8 }
 0xae7   :  { %v963_v3 = vrot.slane %v962_v2, 2 }
 0xae9   :  { %v964_v4 = vadd.f32 %v963_v3, %v962_v2 }
 0xaeb   :  { %v965_v5 = vrot.slane %v964_v4, 1 }
 0xaed   :  { %v966_v6 = vadd.f32 %v965_v5, %v964_v4 }
 0xaef   :  { %1191 = vpush %v966_v6 }
 0xb20   :  { %s1192_s13 = spop %1191 }
 0xb21   :  { %v978_v22 = vstv %s1192_s13 }
 0xb22   :  { %v979_v24 = vsel %vm977_vm5, %v978_v22, 0.0 }
 0xb23   :  { %v980_v25 = vadd.f32 %v979_v24, %v975_v23 }
 0xb25   :  { %981 = vst [vmem:[#allocation4] sm:$0xff] %v980_v25 }
 0xb26   :  { %1277 = shalt.err (!%p1274_p12)
}
 0xb27   :  { %s1278_s17 = scalar_lea.hbm %s1608_s14, 128 }
 0xb28   :  { %p1279_p13 = scmp.ne.s32.totalorder %s1608_s14, %s1278_s17  ;;  %p1282_p0 = scmp.lt.u32.totalorder %s1278_s17, %s1608_s14 }
 0xb2a   :  { %p1284_p1 = pnand %p1282_p0, %p1279_p13 }
 0xb2c   :  { %1287 = shalt.err (!%p1284_p1)
}
 0xb2d   :  { %1001 = dma.vmem_to_hbm [thread:$0]  %s999_s9, 128, %s1608_s14, [#allocation5]  }
 0xb2e   :  { %1288 = dma.done.wait [#allocation3], 64  }
 0xb2f   :  { %1289 = vsyncadd [#allocation3], 4294967232 }
 0xb30   :  { %1290 = dma.done.wait [#allocation5], 128  }
 0xb31   :  { %1291 = vsyncadd [#allocation5], 4294967168 }
 0xb32   :  { %1008 = vsyncpa [#allocation3], 1 }
 0xb33   :  { %1009 = vsyncpa [#allocation5], 1 }

</bundles_post_ra>
